<compile_context>
chip_gen: v5e
topology: v5e:2x2
jax: 0.10.0
libtpu: 0.0.40
codegen_flags: <defaults>
</compile_context>

<pallas_src>
import functools

import jax
import jax.numpy as jnp
from jax import lax
from jax.experimental import pallas as pl
from jax.experimental.pallas import tpu as pltpu

EPS = 1e-5
_LANE = 128
_SUBLANE = 8


def _vmem_capacity_bytes():
    """Physical VMEM per core (falls back to 128 MiB if the query is unavailable)."""
    try:
        info = pltpu.get_tpu_info()
        cap = getattr(info, "vmem_capacity_bytes", None)
        if cap:
            return int(cap)
    except Exception:
        pass
    return 128 << 20


def _round_up(x, m):
    return (x + m - 1) // m * m


# ----------------------------------------------------------------------------
# Single-pass kernel: whole HW resident per row tile.
# ----------------------------------------------------------------------------
def _in_rows_kernel(x_ref, g_ref, b_ref, o_ref):
    # x_ref: (TR, HW); g_ref, b_ref: (TR, 1)
    x = x_ref[...].astype(jnp.float32)
    mean = jnp.mean(x, axis=-1, keepdims=True)            # (TR, 1)
    xc = x - mean                                          # reused for var and y
    var = jnp.mean(xc * xc, axis=-1, keepdims=True)        # population var (unbiased=False)
    inv_std = lax.rsqrt(var + EPS)                         # EUP
    out = g_ref[...] * (xc * inv_std) + b_ref[...]
    o_ref[...] = out.astype(o_ref.dtype)


# ----------------------------------------------------------------------------
# Two-pass streaming fallback: pass 1 accumulates sum / sum-of-squares over HW
# tiles, pass 2 streams again to normalize.
# ----------------------------------------------------------------------------
def _stats_kernel(x_ref, mean_ref, inv_ref, sum_ref, sq_ref, *, hw):
    h = pl.program_id(1)

    @pl.when(h == 0)
    def _():
        sum_ref[...] = jnp.zeros_like(sum_ref)
        sq_ref[...] = jnp.zeros_like(sq_ref)

    x = x_ref[...].astype(jnp.float32)                      # (TR, THW)
    thw = x.shape[-1]
    col = lax.broadcasted_iota(jnp.int32, x.shape, 1) + h * thw
    xm = jnp.where(col < hw, x, 0.0)                        # mask padded tail lanes
    sum_ref[...] += jnp.sum(xm, axis=-1, keepdims=True)
    sq_ref[...] += jnp.sum(xm * xm, axis=-1, keepdims=True)

    @pl.when(h == pl.num_programs(1) - 1)
    def _():
        mean = sum_ref[...] * (1.0 / hw)
        var = jnp.maximum(sq_ref[...] * (1.0 / hw) - mean * mean, 0.0)
        mean_ref[...] = mean
        inv_ref[...] = lax.rsqrt(var + EPS)


def _normalize_kernel(x_ref, mean_ref, inv_ref, g_ref, b_ref, o_ref):
    x = x_ref[...].astype(jnp.float32)
    y = (x - mean_ref[...]) * inv_ref[...]
    o_ref[...] = (g_ref[...] * y + b_ref[...]).astype(o_ref.dtype)


# ----------------------------------------------------------------------------
# Wrapper
# ----------------------------------------------------------------------------
def instancenorm(x, gamma, beta, *, force_two_pass=False):
    """x: (N, C, H, W); gamma, beta: (1, C, 1, 1). Returns (N, C, H, W)."""
    N, C, H, W = x.shape
    HW = H * W
    R = N * C
    in_bytes = jnp.dtype(x.dtype).itemsize
    out_bytes = in_bytes

    # Fold N into the row (sublane) axis; per-row affine params broadcast over N.
    x2 = x.reshape(R, HW)
    g = jnp.broadcast_to(gamma.reshape(1, C), (N, C)).reshape(R, 1).astype(jnp.float32)
    b = jnp.broadcast_to(beta.reshape(1, C), (N, C)).reshape(R, 1).astype(jnp.float32)

    cap = _vmem_capacity_bytes()
    vmem_limit = max(32 << 20, min(int(cap * 0.8), cap - (8 << 20)))
    budget = int(cap * 0.5)  # budget for double-buffered in/out blocks + f32 temps

    hw_lanes = _round_up(HW, _LANE)
    # Per-row bytes for the single-pass block: double-buffered input + output,
    # plus ~2 full-width f32 temporaries inside the kernel.
    per_row = hw_lanes * (2 * in_bytes + 2 * out_bytes + 2 * 4)

    single_pass_fits = (_SUBLANE * per_row) <= budget

    if single_pass_fits and not force_two_pass:
        tr = max(_SUBLANE, min((budget // per_row) // _SUBLANE * _SUBLANE, 1024))
        tr = min(tr, _round_up(R, _SUBLANE))
        r_pad = _round_up(R, tr)
        if r_pad != R:
            pad = r_pad - R
            x2 = jnp.pad(x2, ((0, pad), (0, 0)))
            g = jnp.pad(g, ((0, pad), (0, 0)))
            b = jnp.pad(b, ((0, pad), (0, 0)))

        out2 = pl.pallas_call(
            _in_rows_kernel,
            out_shape=jax.ShapeDtypeStruct((r_pad, HW), x.dtype),
            grid_spec=pltpu.PrefetchScalarGridSpec(
                num_scalar_prefetch=0,
                grid=(r_pad // tr,),
                in_specs=[
                    pl.BlockSpec((tr, HW), lambda r: (r, 0)),
                    pl.BlockSpec((tr, 1), lambda r: (r, 0)),
                    pl.BlockSpec((tr, 1), lambda r: (r, 0)),
                ],
                out_specs=pl.BlockSpec((tr, HW), lambda r: (r, 0)),
            ),
            compiler_params=pltpu.CompilerParams(
                dimension_semantics=("parallel",),
                vmem_limit_bytes=vmem_limit,
            ),
            cost_estimate=pl.CostEstimate(
                flops=6 * R * HW,
                transcendentals=R,
                bytes_accessed=2 * R * HW * in_bytes,
            ),
        )(x2, g, b)
        return out2[:R].reshape(N, C, H, W)

    # ---------------- two-pass streaming fallback ----------------
    tr = _SUBLANE
    r_pad = _round_up(R, tr)
    if r_pad != R:
        pad = r_pad - R
        x2 = jnp.pad(x2, ((0, pad), (0, 0)))
        g = jnp.pad(g, ((0, pad), (0, 0)))
        b = jnp.pad(b, ((0, pad), (0, 0)))
    n_r = r_pad // tr

    per_col = tr * (2 * in_bytes + 2 * out_bytes + 2 * 4)
    thw = max(_LANE, min((budget // per_col) // _LANE * _LANE, hw_lanes))
    if thw >= HW:
        thw = HW
        n_h = 1
    else:
        n_h = pl.cdiv(HW, thw)

    mean, inv_std = pl.pallas_call(
        functools.partial(_stats_kernel, hw=HW),
        out_shape=(
            jax.ShapeDtypeStruct((r_pad, 1), jnp.float32),
            jax.ShapeDtypeStruct((r_pad, 1), jnp.float32),
        ),
        grid_spec=pltpu.PrefetchScalarGridSpec(
            num_scalar_prefetch=0,
            grid=(n_r, n_h),
            in_specs=[pl.BlockSpec((tr, thw), lambda r, h: (r, h))],
            out_specs=(
                pl.BlockSpec((tr, 1), lambda r, h: (r, 0)),
                pl.BlockSpec((tr, 1), lambda r, h: (r, 0)),
            ),
            scratch_shapes=[
                pltpu.VMEM((tr, 1), jnp.float32),
                pltpu.VMEM((tr, 1), jnp.float32),
            ],
        ),
        compiler_params=pltpu.CompilerParams(
            dimension_semantics=("parallel", "arbitrary"),
            vmem_limit_bytes=vmem_limit,
        ),
        cost_estimate=pl.CostEstimate(
            flops=3 * R * HW,
            transcendentals=R,
            bytes_accessed=R * HW * in_bytes,
        ),
    )(x2)

    out2 = pl.pallas_call(
        _normalize_kernel,
        out_shape=jax.ShapeDtypeStruct((r_pad, HW), x.dtype),
        grid_spec=pltpu.PrefetchScalarGridSpec(
            num_scalar_prefetch=0,
            grid=(n_r, n_h),
            in_specs=[
                pl.BlockSpec((tr, thw), lambda r, h: (r, h)),
                pl.BlockSpec((tr, 1), lambda r, h: (r, 0)),
                pl.BlockSpec((tr, 1), lambda r, h: (r, 0)),
                pl.BlockSpec((tr, 1), lambda r, h: (r, 0)),
                pl.BlockSpec((tr, 1), lambda r, h: (r, 0)),
            ],
            out_specs=pl.BlockSpec((tr, thw), lambda r, h: (r, h)),
        ),
        compiler_params=pltpu.CompilerParams(
            dimension_semantics=("parallel", "parallel"),
            vmem_limit_bytes=vmem_limit,
        ),
        cost_estimate=pl.CostEstimate(
            flops=4 * R * HW,
            transcendentals=0,
            bytes_accessed=2 * R * HW * in_bytes,
        ),
    )(x2, mean, inv_std, g, b)
    return out2[:R].reshape(N, C, H, W)


def instancenorm_ref(x, gamma, beta):
    """Pure-JAX reference matching the PyTorch forward."""
    mean = jnp.mean(x, axis=(2, 3), keepdims=True)
    var = jnp.mean((x - mean) ** 2, axis=(2, 3), keepdims=True)
    x_norm = (x - mean) / jnp.sqrt(var + EPS)
    return gamma * x_norm + beta


if __name__ == "__main__":
    key = jax.random.PRNGKey(0)
    kx, kg, kb = jax.random.split(key, 3)
    N, C, H, W = 2, 4, 16, 16

    x = jax.random.normal(kx, (N, C, H, W), dtype=jnp.float32)
    # Module init is gamma=ones, beta=zeros; perturb deterministically so the
    # affine path is actually exercised.
    gamma = jnp.ones((1, C, 1, 1), dtype=jnp.float32) + 0.1 * jax.random.normal(kg, (1, C, 1, 1))
    beta = jnp.zeros((1, C, 1, 1), dtype=jnp.float32) + 0.1 * jax.random.normal(kb, (1, C, 1, 1))

    ref = instancenorm_ref(x, gamma, beta)

    # Main (single-pass, whole-HW-resident) path.
    out = jax.block_until_ready(instancenorm(x, gamma, beta))
    assert out.shape == (N, C, H, W)
    assert jnp.allclose(out, ref, atol=1e-5, rtol=1e-5), "single-pass mismatch vs reference"

    # Also exercise the streaming two-pass fallback (used when HW is too large
    # to keep resident, e.g. on v7x's 64 MiB VMEM).
    out2 = jax.block_until_ready(instancenorm(x, gamma, beta, force_two_pass=True))
    assert jnp.allclose(out2, ref, atol=1e-4, rtol=1e-4), "two-pass mismatch vs reference"

    print("KERNEL_OK")
</pallas_src>

<mosaic_0001>
module attributes {stable_mosaic.version = 11 : i64} {
  func.func @_in_rows_kernel(%arg0: i32, %arg1: memref<8x256xf32, #tpu.memory_space<vmem>>, %arg2: memref<8x1xf32, #tpu.memory_space<vmem>>, %arg3: memref<8x1xf32, #tpu.memory_space<vmem>>, %arg4: memref<8x256xf32, #tpu.memory_space<vmem>>) attributes {dimension_semantics = [#tpu.dimension_semantics<parallel>], iteration_bounds = array<i64: 1>, scalar_prefetch = 0 : i64, scratch_operands = 0 : i64, tpu.core_type = #tpu.core_type<tc>, window_params = [{transform_indices = @transform_0, window_bounds = array<i64: 8, 256>}, {transform_indices = @transform_1, window_bounds = array<i64: 8, 1>}, {transform_indices = @transform_2, window_bounds = array<i64: 8, 1>}, {transform_indices = @transform_3, window_bounds = array<i64: 8, 256>}]} {
    %c0 = arith.constant 0 : index
    %c0_0 = arith.constant 0 : index
    %0 = vector.load %arg1[%c0, %c0_0] : memref<8x256xf32, #tpu.memory_space<vmem>>, vector<8x256xf32>
    %cst = arith.constant dense<0.000000e+00> : vector<8xf32>
    %1 = vector.multi_reduction <add>, %0, %cst [1] : vector<8x256xf32> to vector<8xf32>
    %2 = vector.shape_cast %1 : vector<8xf32> to vector<8x1xf32>
    %cst_1 = arith.constant 2.560000e+02 : f32
    %3 = vector.broadcast %cst_1 : f32 to vector<8x1xf32>
    %4 = arith.divf %2, %3 : vector<8x1xf32>
    %5 = vector.broadcast %4 : vector<8x1xf32> to vector<8x256xf32>
    %6 = arith.subf %0, %5 : vector<8x256xf32>
    %7 = arith.mulf %6, %6 : vector<8x256xf32>
    %cst_2 = arith.constant dense<0.000000e+00> : vector<8xf32>
    %8 = vector.multi_reduction <add>, %7, %cst_2 [1] : vector<8x256xf32> to vector<8xf32>
    %9 = vector.shape_cast %8 : vector<8xf32> to vector<8x1xf32>
    %cst_3 = arith.constant 2.560000e+02 : f32
    %10 = vector.broadcast %cst_3 : f32 to vector<8x1xf32>
    %11 = arith.divf %9, %10 : vector<8x1xf32>
    %cst_4 = arith.constant 9.99999974E-6 : f32
    %12 = vector.broadcast %cst_4 : f32 to vector<8x1xf32>
    %13 = arith.addf %11, %12 : vector<8x1xf32>
    %14 = math.rsqrt %13 : vector<8x1xf32>
    %c0_5 = arith.constant 0 : index
    %c0_6 = arith.constant 0 : index
    %15 = vector.load %arg2[%c0_5, %c0_6] : memref<8x1xf32, #tpu.memory_space<vmem>>, vector<8x1xf32>
    %16 = vector.broadcast %14 : vector<8x1xf32> to vector<8x256xf32>
    %17 = arith.mulf %6, %16 : vector<8x256xf32>
    %18 = vector.broadcast %15 : vector<8x1xf32> to vector<8x256xf32>
    %19 = arith.mulf %18, %17 : vector<8x256xf32>
    %c0_7 = arith.constant 0 : index
    %c0_8 = arith.constant 0 : index
    %20 = vector.load %arg3[%c0_7, %c0_8] : memref<8x1xf32, #tpu.memory_space<vmem>>, vector<8x1xf32>
    %21 = vector.broadcast %20 : vector<8x1xf32> to vector<8x256xf32>
    %22 = arith.addf %19, %21 : vector<8x256xf32>
    %c0_9 = arith.constant 0 : index
    %c0_10 = arith.constant 0 : index
    %23 = vector.load %arg4[%c0_9, %c0_10] : memref<8x256xf32, #tpu.memory_space<vmem>>, vector<8x256xf32>
    tpu.vector_store %arg4[%c0_9, %c0_10], %22 {strides = array<i32>} : memref<8x256xf32, #tpu.memory_space<vmem>>, vector<8x256xf32>,
    return
  }
  func.func @transform_0(%arg0: i32) -> (i32, i32) {
    %c0_i32 = arith.constant 0 : i32
    %c0_i32_0 = arith.constant 0 : i32
    return %arg0, %c0_i32 : i32, i32
  }
  func.func @transform_1(%arg0: i32) -> (i32, i32) {
    %c0_i32 = arith.constant 0 : i32
    %c0_i32_0 = arith.constant 0 : i32
    return %arg0, %c0_i32 : i32, i32
  }
  func.func @transform_2(%arg0: i32) -> (i32, i32) {
    %c0_i32 = arith.constant 0 : i32
    %c0_i32_0 = arith.constant 0 : i32
    return %arg0, %c0_i32 : i32, i32
  }
  func.func @transform_3(%arg0: i32) -> (i32, i32) {
    %c0_i32 = arith.constant 0 : i32
    %c0_i32_0 = arith.constant 0 : i32
    return %arg0, %c0_i32 : i32, i32
  }
}

</mosaic_0001>

<bundles_post_ra>
// kernel: tpu_custom_call.1
= control target key start
LH: loop header
LB: loop body
LE: loop exit
PB: predicated region body
PF: predicated region fallthrough
CT: control target
= control target key end

     0   :  { %s156_s0 = inlined_call_operand.vmem [shape: f32[8,256], index: 0, kind: input, shape index: {}]   ;;  %s157_s1 = inlined_call_operand.vmem [shape: f32[8,1], index: 1, kind: input, shape index: {}]   ;;  %s158_s2 = inlined_call_operand.vmem [shape: f32[8,1], index: 2, kind: input, shape index: {}]   ;;  %s159_s3 = inlined_call_operand.hbm [shape: f32[8,256], index: 3, kind: output, shape index: {}]  }
   0x1   :  { %v15_v0 = vld [vmem:[%s156_s0] sm:$0xff]  ;;  %v16_v1 = vld [vmem:[%s156_s0 + $0x8] sm:$0xff] }
   0x2   :  { %8 = vsyncpa [#allocation3], 0  ;;  %v17_v2 = vadd.f32 %v16_v1, %v15_v0  ;;  %v118_v3 = vmov 256.0   ;;  %v47_v4 = vld [vmem:[%s157_s1] sm:$0xff]  ;;  %v119_v5 = vmov 0   ;;  %s120_s0 = smov [#allocation2]  }
   0x3   :  { %88 = vrcp.f32 %v118_v3  ;;  %86 = vset.pattern.permute.xlu1 %v119_v5  ;;  %87 = vset.pattern.permute.xlu0 %v119_v5  ;;  %v57_v8 = vld [vmem:[%s158_s2] sm:$0xff]  ;;  %s72_s1 = sshll.u32 %s120_s0, 4  ;;  %s74_s21 = sshll.u32 %s159_s3, 4  ;;  %s73_s1 = int_to_ptr.vmem [resolvable:$true] %s72_s1  ;;  %s75_s21 = int_to_ptr.hbm [resolvable:$true] %s74_s21 }
   0x4   :  { %18 = vadd.xlane.f32.xlu0 %v17_v2  ;;  %52 = vperm.xlu1 %86, %v47_v4  }
   0x9   :  { %v89_v6 = vpop.eup %88 }
   0xa   :  { %v21_v7 = vmul.f32 256.0, %v89_v6  ;;  %vm25_vm0 = vweird.f32 %v89_v6 }
   0xc   :  { %v22_v9 = vsub.f32 1.0, %v21_v7  ;;  %60 = vperm.xlu1 %86, %v57_v8  }
   0xe   :  { %v23_v10 = vmul.f32 %v89_v6, %v22_v9 }
  0x10   :  { %v24_v11 = vadd.f32 %v89_v6, %v23_v10 }
  0x12   :  { %v26_v12 = vsel %vm25_vm0, %v89_v6, %v24_v11 }
  0x76   :  { %v53_v27 = vpop.permute.xlu1 %52 }
  0x77   :  { %v19_v13 = vpop.xlane.xlu0 %18 }
  0x78   :  { %v27_v14 = vmul.f32 %v26_v12, %v19_v13 }
  0x7a   :  { %v28_v15 = vsub.f32 %v15_v0, %v27_v14  ;;  %v29_v16 = vsub.f32 %v16_v1, %v27_v14 }
  0x7c   :  { %v30_v17 = vmul.f32 %v28_v15, %v28_v15  ;;  %v31_v18 = vmul.f32 %v29_v16, %v29_v16 }
  0x7e   :  { %v32_v19 = vadd.f32 %v31_v18, %v30_v17  ;;  %v61_v35 = vpop.permute.xlu1 %60 }
  0x80   :  { %33 = vadd.xlane.f32.xlu0 %v32_v19 }
  0xf3   :  { %v34_v20 = vpop.xlane.xlu0 %33 }
  0xf4   :  { %v35_v21 = vmul.f32 %v34_v20, %v26_v12 }
  0xf6   :  { %v36_v22 = vadd.f32 1e-05, %v35_v21 }
  0xf8   :  { %90 = vrsqrt.f32 %v36_v22  ;;  %vm43_vm2 = vweird.f32 %v36_v22 }
  0xfe   :  { %v91_v23 = vpop.eup %90 }
  0xff   :  { %v38_v24 = vmul.f32 %v91_v23, %v36_v22  ;;  %vm44_vm1 = vweird.f32 %v91_v23 }
 0x100   :  { %vm45_vm3 = vmor %vm43_vm2, %vm44_vm1 }
 0x101   :  { %v39_v25 = vmul.f32 %v91_v23, %v38_v24 }
 0x103   :  { %v40_v26 = vmul.f32 0.5, %v39_v25 }
 0x105   :  { %v41_v28 = vsub.f32 1.5, %v40_v26 }
 0x107   :  { %v42_v29 = vmul.f32 %v91_v23, %v41_v28 }
 0x109   :  { %v46_v30 = vsel %vm45_vm3, %v91_v23, %v42_v29 }
 0x10a   :  { %v48_v31 = vmul.f32 %v46_v30, %v28_v15  ;;  %v49_v32 = vmul.f32 %v46_v30, %v29_v16 }
 0x10c   :  { %v55_v33 = vmul.f32 %v53_v27, %v48_v31  ;;  %v56_v34 = vmul.f32 %v53_v27, %v49_v32 }
 0x10e   :  { %v63_v36 = vadd.f32 %v61_v35, %v55_v33  ;;  %v64_v37 = vadd.f32 %v61_v35, %v56_v34 }
 0x110   :  { %65 = vst [vmem:[#allocation2] sm:$0xff] %v63_v36 }
 0x111   :  { %66 = vst [vmem:[#allocation2 + $0x8] sm:$0xff] %v64_v37 }
 0x112   :  { %77 = dma.vmem_to_hbm [thread:$0]  %s73_s1, 256, %s75_s21, [#allocation3]  }
 0x113   :  { %116 = dma.done.wait [#allocation3], 256  }
 0x114   :  { %117 = vsyncadd [#allocation3], 4294967040 }
 0x115   :  { %82 = vsyncpa [#allocation3], 1 }

</bundles_post_ra>
